<compile_context>
chip_gen: v7x
topology: tpu7x:2x2x1
jax: 0.10.0
libtpu: 0.0.40
codegen_flags: <defaults>
</compile_context>

<pallas_src>
import functools

import jax
import jax.numpy as jnp
from jax.experimental import pallas as pl
from jax.experimental.pallas import tpu as pltpu


def _cdiv(a: int, b: int) -> int:
    return -(-a // b)


def _round_up(a: int, b: int) -> int:
    return _cdiv(a, b) * b


def _pad_waveform_kernel(x_ref, o_ref, *, full_blocks, rem, zero_start, n_blocks):
    """Per time-block: full copy, boundary (copy prefix + zero tail), or zeros.

    Every output block is written exactly once; the three regimes are disjoint.
    `full_blocks`, `rem`, `zero_start`, `n_blocks` are Python ints, so branches
    that cannot occur for a given (copy_len, target_length) are never emitted.
    """
    j = pl.program_id(0)

    if full_blocks > 0:
        @pl.when(j < full_blocks)
        def _copy_full():
            # Unmasked, lane-dense full-block copy (the common case).
            o_ref[...] = x_ref[...]

    if rem > 0:
        @pl.when(j == full_blocks)
        def _copy_boundary():
            # Single boundary block: copy the first `rem` lanes, zero the rest.
            # (Also masks any garbage lanes of a partial edge input block.)
            lane = jax.lax.broadcasted_iota(jnp.int32, o_ref.shape, 1)
            x = x_ref[...]
            o_ref[...] = jnp.where(lane < rem, x, jnp.zeros_like(x))

    if zero_start < n_blocks:
        @pl.when(j >= zero_start)
        def _zero_tail():
            o_ref[...] = jnp.zeros_like(o_ref)


def pad_waveform_pallas(waveform: jax.Array, target_length: int = 16000,
                        *, block_t: int | None = None) -> jax.Array:
    """Pad (trailing zeros) or truncate the last axis to `target_length`.

    Expects a 2-D (channels, time) waveform (the well-defined case of the
    PyTorch reference).
    """
    assert waveform.ndim == 2, "expected (channels, time) waveform"
    channels, current_length = waveform.shape
    dtype = waveform.dtype
    itemsize = jnp.dtype(dtype).itemsize
    copy_len = min(current_length, target_length)

    # Lane-aligned time tile. Default: ~512 KiB per block (per buffer), so even
    # double-buffered in+out stays far below v7x's 64 MiB VMEM / 32 MiB scoped
    # default, while tiny audio clips (e.g. 16000 samples) get a single block.
    if block_t is None:
        budget_lanes = max(128, (512 * 1024) // max(1, channels * itemsize))
        block_t = min(_round_up(target_length, 128), _round_up(budget_lanes, 128))
    else:
        block_t = _round_up(max(1, block_t), 128)

    n_blocks = _cdiv(target_length, block_t)      # output grid
    full_blocks = copy_len // block_t             # blocks copied unmasked
    rem = copy_len % block_t                      # valid lanes in boundary block
    zero_start = full_blocks + (1 if rem > 0 else 0)
    n_needed = max(1, _cdiv(copy_len, block_t))   # last input block ever read

    kernel = functools.partial(
        _pad_waveform_kernel,
        full_blocks=full_blocks, rem=rem, zero_start=zero_start, n_blocks=n_blocks,
    )

    # Input index clamped to the last needed block: the truncated tail is never
    # read, and pure-zero output blocks re-reference the same (already resident)
    # input block instead of fetching new data.
    in_spec = pl.BlockSpec(
        (channels, block_t), lambda j: (0, jnp.minimum(j, n_needed - 1)))
    out_spec = pl.BlockSpec((channels, block_t), lambda j: (0, j))

    return pl.pallas_call(
        kernel,
        out_shape=jax.ShapeDtypeStruct((channels, target_length), dtype),
        grid=(n_blocks,),
        in_specs=[in_spec],
        out_specs=out_spec,
        compiler_params=pltpu.CompilerParams(
            dimension_semantics=("parallel",),
        ),
    )(waveform)


def _reference(waveform: jax.Array, target_length: int) -> jax.Array:
    cur = waveform.shape[-1]
    if cur < target_length:
        return jnp.pad(waveform, ((0, 0), (0, target_length - cur)))
    if cur > target_length:
        return waveform[:, :target_length]
    return waveform


if __name__ == "__main__":
    key = jax.random.PRNGKey(0)
    k1, k2, k3, k4, k5 = jax.random.split(key, 5)

    # TODO(synk): the PyTorch reference's truncation branch slices axis 1
    # (`waveform[:, :target_length]`), which for a 3-D (batch, channels, time)
    # input would slice channels — we implement the well-defined 2-D
    # (channels, time) semantics here; vmap for batched inputs.

    ok = True

    # Case 1: shorter than target -> zero-pad on the right (single block,
    # boundary mask path).
    x_short = jax.random.normal(k1, (4, 100), dtype=jnp.float32)
    y = jax.block_until_ready(pad_waveform_pallas(x_short, 128))
    ok &= y.shape == (4, 128) and bool(jnp.allclose(y, _reference(x_short, 128)))

    # Case 2: longer than target -> truncate (tail never read).
    x_long = jax.random.normal(k2, (4, 200), dtype=jnp.float32)
    y = jax.block_until_ready(pad_waveform_pallas(x_long, 128))
    ok &= y.shape == (4, 128) and bool(jnp.allclose(y, _reference(x_long, 128)))

    # Case 3: exact length -> pure copy path only.
    x_exact = jax.random.normal(k3, (4, 128), dtype=jnp.float32)
    y = jax.block_until_ready(pad_waveform_pallas(x_exact, 128))
    ok &= bool(jnp.allclose(y, _reference(x_exact, 128)))

    # Case 4: multi-block pad (forced small tile): full blocks + masked
    # boundary block + zero-only blocks.
    x_multi = jax.random.normal(k4, (2, 300), dtype=jnp.float32)
    y = jax.block_until_ready(pad_waveform_pallas(x_multi, 1024, block_t=128))
    ok &= y.shape == (2, 1024) and bool(jnp.allclose(y, _reference(x_multi, 1024)))

    # Case 5: multi-block truncate with a partial final output block and a
    # non-multiple-of-8 channel count.
    x_trunc = jax.random.normal(k5, (3, 1200), dtype=jnp.float32)
    y = jax.block_until_ready(pad_waveform_pallas(x_trunc, 1000, block_t=256))
    ok &= y.shape == (3, 1000) and bool(jnp.allclose(y, _reference(x_trunc, 1000)))

    assert ok, "mismatch against reference"
    print("KERNEL_OK")
</pallas_src>

<mosaic_0001>
module attributes {stable_mosaic.version = 11 : i64} {
  func.func @_pad_waveform_kernel(%arg0: i32, %arg1: memref<4x128xf32, #tpu.memory_space<vmem>>, %arg2: memref<4x128xf32, #tpu.memory_space<vmem>>) attributes {dimension_semantics = [#tpu.dimension_semantics<parallel>], iteration_bounds = array<i64: 1>, scalar_prefetch = 0 : i64, scratch_operands = 0 : i64, tpu.core_type = #tpu.core_type<tc>, window_params = [{transform_indices = @transform_0, window_bounds = array<i64: 4, 128>}, {transform_indices = @transform_1, window_bounds = array<i64: 4, 128>}]} {
    %c0_i32 = arith.constant 0 : i32
    %0 = arith.cmpi eq, %arg0, %c0_i32 : i32
    %1 = arith.extui %0 : i1 to i32
    %c0_i32_0 = arith.constant 0 : i32
    %2 = arith.cmpi ne, %1, %c0_i32_0 : i32
    scf.if %2 {
      %3 = tpu.iota {dimensions = array<i32: 1>} : vector<4x128xi32>
      %c0 = arith.constant 0 : index
      %c0_1 = arith.constant 0 : index
      %4 = vector.load %arg1[%c0, %c0_1] : memref<4x128xf32, #tpu.memory_space<vmem>>, vector<4x128xf32>
      %c100_i32 = arith.constant 100 : i32
      %5 = vector.broadcast %c100_i32 : i32 to vector<4x128xi32>
      %6 = arith.cmpi slt, %3, %5 : vector<4x128xi32>
      %cst = arith.constant 0.000000e+00 : f32
      %7 = vector.broadcast %cst : f32 to vector<4x128xf32>
      %8 = arith.select %6, %4, %7 : vector<4x128xi1>, vector<4x128xf32>
      %c0_2 = arith.constant 0 : index
      %c0_3 = arith.constant 0 : index
      %9 = vector.load %arg2[%c0_2, %c0_3] : memref<4x128xf32, #tpu.memory_space<vmem>>, vector<4x128xf32>
      tpu.vector_store %arg2[%c0_2, %c0_3], %8 {strides = array<i32>} : memref<4x128xf32, #tpu.memory_space<vmem>>, vector<4x128xf32>,
    } else {
    }
    return
  }
  func.func @transform_0(%arg0: i32) -> (i32, i32) {
    %c0_i32 = arith.constant 0 : i32
    %0 = arith.minsi %arg0, %c0_i32 : i32
    %c0_i32_0 = arith.constant 0 : i32
    %c0_i32_1 = arith.constant 0 : i32
    return %c0_i32_0, %0 : i32, i32
  }
  func.func @transform_1(%arg0: i32) -> (i32, i32) {
    %c0_i32 = arith.constant 0 : i32
    %c0_i32_0 = arith.constant 0 : i32
    return %c0_i32, %arg0 : i32, i32
  }
}

</mosaic_0001>

<bundles_post_ra>
// kernel: tpu_custom_call.1
= control target key start
LH: loop header
LB: loop body
LE: loop exit
PB: predicated region body
PF: predicated region fallthrough
CT: control target
= control target key end

     0   :  { %6 = vsyncpa [#allocation3], 0  ;;  %s132_s0 = inlined_call_operand.hbm [shape: f32[4,100], index: 0, kind: input, shape index: {}]   ;;  %s133_s1 = inlined_call_operand.hbm [shape: f32[4,128], index: 1, kind: output, shape index: {}]  }
   0x1   :  { %7 = vsyncpa [#allocation4], 0  ;;  %s96_s6 = smov [#allocation2]   ;;  %s48_s10 = scalar_lea.hbm %s132_s0, 64 }
   0x2   :  { %s14_s7 = sshll.u32 %s96_s6, 4  ;;  %p49_p0 = scmp.ne.s32.totalorder %s132_s0, %s48_s10  ;;  %s15_s7 = int_to_ptr.vmem [resolvable:$true] %s14_s7 }
   0x3   :  { %p52_p1 = scmp.lt.u32.totalorder %s48_s10, %s132_s0 }
   0x5   :  { %p54_p2 = pnand %p52_p1, %p49_p0 }
   0x7   :  { %57 = shalt.err (!%p54_p2)
}
   0x8   :  { %s58_s15 = scalar_lea.vmem %s15_s7, 64  ;;  %p63_p4 = scmp.lt.s32.totalorder %s15_s7, %s15_s7 }
   0x9   :  { %p59_p3 = scmp.ne.s32.totalorder %s15_s7, %s58_s15  ;;  %p64_p5 = scmp.lt.s32.totalorder %s58_s15, %s58_s15 }
   0xb   :  { %p65_p6 = por %p64_p5, %p63_p4 }
   0xd   :  { %p66_p7 = pnand %p65_p6, %p59_p3 }
   0xf   :  { %69 = shalt.err (!%p66_p7)
}
  0x10   :  { %17 = dma.hbm_to_vmem [thread:$0]  %s132_s0, 64, %s15_s7, [#allocation3]  }
  0x11   :  { %92 = dma.done.wait [#allocation3], 64  }
  0x12   :  { %93 = vsyncadd [#allocation3], 4294967232  ;;  %v25_v0 = vlaneseq  ;;  %s97_s18 = smov [#allocation5]   ;;  %v27_v2 = vld [vmem:[#allocation2] sm:$0xf] }
  0x13   :  { %s37_s19 = sshll.u32 %s97_s18, 4  ;;  %s38_s19 = int_to_ptr.vmem [resolvable:$true] %s37_s19 }
  0x14   :  { %v26_v1 = vand.u32 127, %v25_v0  ;;  %s70_s20 = scalar_lea.vmem %s38_s19, 64  ;;  %p75_p9 = scmp.lt.s32.totalorder %s38_s19, %s38_s19 }
  0x15   :  { %p71_p8 = scmp.ne.s32.totalorder %s38_s19, %s70_s20  ;;  %p76_p10 = scmp.lt.s32.totalorder %s70_s20, %s70_s20 }
  0x16   :  { %vm28_vm0 = vcmp.lt.s32.totalorder %v26_v1, 100 }
  0x17   :  { %v29_v3 = vsel %vm28_vm0, %v27_v2, 0.0  ;;  %p77_p11 = por %p76_p10, %p75_p9 }
  0x18   :  { %30 = vst [vmem:[#allocation5] sm:$0xf] %v29_v3 }
  0x19   :  { %p78_p12 = pnand %p77_p11, %p71_p8 }
  0x1b   :  { %81 = shalt.err (!%p78_p12)
}
  0x1c   :  { %s82_s22 = scalar_lea.hbm %s133_s1, 64 }
  0x1d   :  { %p83_p13 = scmp.ne.s32.totalorder %s133_s1, %s82_s22  ;;  %p86_p0 = scmp.lt.u32.totalorder %s82_s22, %s133_s1 }
  0x1f   :  { %p88_p1 = pnand %p86_p0, %p83_p13 }
  0x21   :  { %91 = shalt.err (!%p88_p1)
}
  0x22   :  { %40 = dma.vmem_to_hbm [thread:$0]  %s38_s19, 64, %s133_s1, [#allocation4]  }
  0x23   :  { %94 = dma.done.wait [#allocation4], 64  }
  0x24   :  { %95 = vsyncadd [#allocation4], 4294967232 }
  0x25   :  { %44 = vsyncpa [#allocation3], 1 }
  0x26   :  { %45 = vsyncpa [#allocation4], 1 }

</bundles_post_ra>
